<compile_context>
chip_gen: v5e
topology: v5e:2x2
jax: 0.10.0
libtpu: 0.0.40
codegen_flags: <defaults>
</compile_context>

<pallas_src>
import functools

import jax
import jax.numpy as jnp
from jax import lax
from jax.experimental import pallas as pl
from jax.experimental.pallas import tpu as pltpu

# ----- module hyper-parameters (from __init__) -----
P_EMBED = 4
D_MODEL = 32
N_INPUT_DIM = 4
POSE_ENC_SIZE = N_INPUT_DIM * (1 + 2 * P_EMBED)   # 36
D_HALF = D_MODEL // 2                              # 16

_LANE = 128


def _round_up(x, n):
    return (x + n - 1) // n * n


def _pose_encoder_kernel(p_embed, pos_ref, w1i_ref, w1t_ref, b1_ref,
                         w2t_ref, b2_ref, out_ref):
    """Fused Fourier encoding + Linear-ReLU-Linear.

    pos_ref: (n_in, tm)        token tile, tokens on lanes (lane-dense trig)
    w1i_ref: (d_half, n_in)    first Linear, identity columns
    w1t_ref: (d_half, 2*p_embed*n_in)  first Linear, sin/cos columns
    b1_ref:  (d_half, 1)
    w2t_ref: (d_half, d_model) second Linear, transposed (in, out)
    b2_ref:  (1, d_model)
    out_ref: (tm, d_model)     token-major output block
    """
    pos = pos_ref[...]                                     # (n_in, tm)

    # First Linear, identity part of the encoding.
    h = jnp.dot(w1i_ref[...], pos,
                preferred_element_type=jnp.float32) + b1_ref[...]

    # Base-frequency sin/cos once; higher octaves via double-angle
    # recurrences (sin(2x) = 2 s c, cos(2x) = 1 - 2 s^2) -> ~4x fewer
    # transcendental (VPU polynomial) evaluations.
    s = jnp.sin(pos)
    c = jnp.cos(pos)
    levels = []
    for i in range(p_embed):
        levels.append(s)                                   # sin(2^i * pos)
        levels.append(c)                                   # cos(2^i * pos)
        if i + 1 < p_embed:
            s, c = 2.0 * s * c, 1.0 - 2.0 * (s * s)
    trig = jnp.concatenate(levels, axis=0)                 # (32, tm), 8-row aligned

    h = h + jnp.dot(w1t_ref[...], trig, preferred_element_type=jnp.float32)
    h = jnp.maximum(h, 0.0)                                # (d_half, tm)

    # Second Linear with the token axis moved to sublanes by the matmul
    # itself: contract dim 0 of h with dim 0 of w2_t ("TN" dimension
    # numbers) -> (tm, d_model). No standalone transpose, no wrapper-side
    # output transpose / extra HBM pass.
    out = lax.dot_general(h, w2t_ref[...],
                          dimension_numbers=(((0,), (0,)), ((), ())),
                          preferred_element_type=jnp.float32) + b2_ref[...]
    out_ref[...] = out.astype(out_ref.dtype)


def _choose_tiling(m, tm_max):
    """Token tile (multiple of 128 lanes) and number of grid steps."""
    m_aligned = _round_up(m, _LANE)
    steps = max(1, -(-m_aligned // tm_max))
    # Keep >=2 grid steps when there is enough work so both v7x TensorCores
    # get a shard of the "parallel" token axis (harmless on v5e/v6e).
    if steps == 1 and m_aligned >= 2 * _LANE:
        steps = 2
    tm = _round_up(-(-m_aligned // steps), _LANE)
    steps = -(-m_aligned // tm)
    return tm, steps


def pose_encoder_fourier_mlp(position, w1, b1, w2, b2, *,
                             p_embed=P_EMBED, tm_max=8192):
    """position: (..., n_input_dim) -> (..., d_model).

    Weights in PyTorch nn.Linear layout: w1 (d_half, pose_enc_size),
    w2 (d_model, d_half); biases 1-D (out_features,).
    tm_max: max tokens per grid step (use ~4096 on v5e, 8192 on v6e,
    16384 on v7x).
    """
    lead_shape = position.shape[:-1]
    n_in = position.shape[-1]
    d_half, pose_enc_size = w1.shape
    d_model = w2.shape[0]
    n_rep = 1 + 2 * p_embed
    assert pose_enc_size == n_in * n_rep
    assert tm_max % _LANE == 0

    pos2d = position.reshape(-1, n_in).astype(jnp.float32)
    m = pos2d.shape[0]
    if m == 0:                                   # degenerate empty batch
        return jnp.zeros((*lead_shape, d_model), dtype=position.dtype)

    tm, steps = _choose_tiling(m, tm_max)
    m_pad = tm * steps

    # Tokens-on-lanes input (small transpose; padding is zeros -> sin(0)=0,
    # cos(0)=1, no NaNs in the discarded rows).
    pos_t = jnp.pad(pos2d, ((0, m_pad - m), (0, 0))).T     # (n_in, m_pad)

    # Host-side weight prep (tiny): split W1 into identity / trig columns
    # (PyTorch concat order is [pos, sin(2^0 p), cos(2^0 p), sin(2^1 p), ...],
    # which matches the in-kernel trig row order exactly), transpose W2.
    w1 = w1.astype(jnp.float32)
    w1_id = w1[:, :n_in]                                   # (d_half, n_in)
    w1_trig = w1[:, n_in:]                                 # (d_half, 2*p_embed*n_in)
    b1_col = b1.astype(jnp.float32).reshape(d_half, 1)
    w2_t = w2.astype(jnp.float32).T                        # (d_half, d_model)
    b2_row = b2.astype(jnp.float32).reshape(1, d_model)

    kernel = functools.partial(_pose_encoder_kernel, p_embed)

    def resident(shape):
        return pl.BlockSpec(shape, lambda i: (0, 0))

    out = pl.pallas_call(
        kernel,
        out_shape=jax.ShapeDtypeStruct((m_pad, d_model), position.dtype),
        grid_spec=pltpu.PrefetchScalarGridSpec(
            num_scalar_prefetch=0,
            grid=(steps,),
            in_specs=[
                pl.BlockSpec((n_in, tm), lambda i: (0, i)),   # token tile
                resident(w1_id.shape),
                resident(w1_trig.shape),
                resident(b1_col.shape),
                resident(w2_t.shape),
                resident(b2_row.shape),
            ],
            out_specs=pl.BlockSpec((tm, d_model), lambda i: (i, 0)),
        ),
        compiler_params=pltpu.CompilerParams(
            dimension_semantics=("parallel",),
            vmem_limit_bytes=48 * 1024 * 1024,
        ),
    )(pos_t, w1_id, w1_trig, b1_col, w2_t, b2_row)

    return out[:m].reshape(*lead_shape, d_model)


def _reference(position, w1, b1, w2, b2, p_embed=P_EMBED):
    """Pure-JAX reference mirroring the PyTorch forward (weights (out, in))."""
    rets = [position]
    for i in range(p_embed):
        rets.append(jnp.sin(2.0 ** i * position))
        rets.append(jnp.cos(2.0 ** i * position))
    enc = jnp.concatenate(rets, axis=-1)
    h = jnp.maximum(enc @ w1.T + b1, 0.0)
    return h @ w2.T + b2


if __name__ == "__main__":
    key = jax.random.PRNGKey(0)
    k_pos, k_w1, k_b1, k_w2, k_b2, k_pos2 = jax.random.split(key, 6)

    batch, seq = 2, 8
    position = jax.random.normal(k_pos, (batch, seq, N_INPUT_DIM), dtype=jnp.float32)

    # PyTorch nn.Linear layout: weight (out_features, in_features), bias (out,).
    w1 = jax.random.normal(k_w1, (D_HALF, POSE_ENC_SIZE), dtype=jnp.float32) * 0.1
    b1 = jax.random.normal(k_b1, (D_HALF,), dtype=jnp.float32) * 0.1
    w2 = jax.random.normal(k_w2, (D_MODEL, D_HALF), dtype=jnp.float32) * 0.1
    b2 = jax.random.normal(k_b2, (D_MODEL,), dtype=jnp.float32) * 0.1

    out = jax.block_until_ready(pose_encoder_fourier_mlp(position, w1, b1, w2, b2))
    ref = _reference(position, w1, b1, w2, b2)
    assert out.shape == (batch, seq, D_MODEL)
    assert jnp.allclose(out, ref, atol=1e-4, rtol=1e-4), "mismatch vs reference (case 1)"

    # Second case exercises padding + a multi-step grid (megacore sharding).
    position2 = jax.random.normal(k_pos2, (3, 100, N_INPUT_DIM), dtype=jnp.float32)
    out2 = jax.block_until_ready(pose_encoder_fourier_mlp(position2, w1, b1, w2, b2))
    ref2 = _reference(position2, w1, b1, w2, b2)
    assert out2.shape == (3, 100, D_MODEL)
    assert jnp.allclose(out2, ref2, atol=1e-4, rtol=1e-4), "mismatch vs reference (case 2)"

    print("KERNEL_OK")
</pallas_src>

<mosaic_0001>
module attributes {stable_mosaic.version = 11 : i64} {
  func.func @_pose_encoder_kernel(%arg0: i32, %arg1: memref<4x128xf32, #tpu.memory_space<vmem>>, %arg2: memref<16x4xf32, #tpu.memory_space<vmem>>, %arg3: memref<16x32xf32, #tpu.memory_space<vmem>>, %arg4: memref<16x1xf32, #tpu.memory_space<vmem>>, %arg5: memref<16x32xf32, #tpu.memory_space<vmem>>, %arg6: memref<1x32xf32, #tpu.memory_space<vmem>>, %arg7: memref<128x32xf32, #tpu.memory_space<vmem>>) attributes {dimension_semantics = [#tpu.dimension_semantics<parallel>], iteration_bounds = array<i64: 1>, scalar_prefetch = 0 : i64, scratch_operands = 0 : i64, tpu.core_type = #tpu.core_type<tc>, window_params = [{transform_indices = @transform_0, window_bounds = array<i64: 4, 128>}, {pipeline_mode = #tpu.pipeline_mode<synchronous>, transform_indices = @transform_1, window_bounds = array<i64: 16, 4>}, {pipeline_mode = #tpu.pipeline_mode<synchronous>, transform_indices = @transform_2, window_bounds = array<i64: 16, 32>}, {pipeline_mode = #tpu.pipeline_mode<synchronous>, transform_indices = @transform_3, window_bounds = array<i64: 16, 1>}, {pipeline_mode = #tpu.pipeline_mode<synchronous>, transform_indices = @transform_4, window_bounds = array<i64: 16, 32>}, {pipeline_mode = #tpu.pipeline_mode<synchronous>, transform_indices = @transform_5, window_bounds = array<i64: 1, 32>}, {transform_indices = @transform_6, window_bounds = array<i64: 128, 32>}]} {
    %c0 = arith.constant 0 : index
    %c0_0 = arith.constant 0 : index
    %0 = vector.load %arg1[%c0, %c0_0] : memref<4x128xf32, #tpu.memory_space<vmem>>, vector<4x128xf32>
    %c0_1 = arith.constant 0 : index
    %c0_2 = arith.constant 0 : index
    %1 = vector.load %arg2[%c0_1, %c0_2] : memref<16x4xf32, #tpu.memory_space<vmem>>, vector<16x4xf32>
    %cst = arith.constant dense<0.000000e+00> : vector<16x128xf32>
    %2 = tpu.matmul %1, %0, %cst {dimension_numbers = #tpu.dot_dimension_numbers<[1], [0], [0], [1], [0, 0, 1, 1], [], []>} : vector<16x4xf32>, vector<4x128xf32>, vector<16x128xf32> -> vector<16x128xf32>
    %c0_3 = arith.constant 0 : index
    %c0_4 = arith.constant 0 : index
    %3 = vector.load %arg4[%c0_3, %c0_4] : memref<16x1xf32, #tpu.memory_space<vmem>>, vector<16x1xf32>
    %4 = vector.broadcast %3 : vector<16x1xf32> to vector<16x128xf32>
    %5 = arith.addf %2, %4 : vector<16x128xf32>
    %6 = math.sin %0 : vector<4x128xf32>
    %7 = math.cos %0 : vector<4x128xf32>
    %cst_5 = arith.constant 2.000000e+00 : f32
    %8 = vector.broadcast %cst_5 : f32 to vector<4x128xf32>
    %9 = arith.mulf %8, %6 : vector<4x128xf32>
    %10 = arith.mulf %9, %7 : vector<4x128xf32>
    %11 = arith.mulf %6, %6 : vector<4x128xf32>
    %cst_6 = arith.constant 2.000000e+00 : f32
    %12 = vector.broadcast %cst_6 : f32 to vector<4x128xf32>
    %13 = arith.mulf %12, %11 : vector<4x128xf32>
    %cst_7 = arith.constant 1.000000e+00 : f32
    %14 = vector.broadcast %cst_7 : f32 to vector<4x128xf32>
    %15 = arith.subf %14, %13 : vector<4x128xf32>
    %cst_8 = arith.constant 2.000000e+00 : f32
    %16 = vector.broadcast %cst_8 : f32 to vector<4x128xf32>
    %17 = arith.mulf %16, %10 : vector<4x128xf32>
    %18 = arith.mulf %17, %15 : vector<4x128xf32>
    %19 = arith.mulf %10, %10 : vector<4x128xf32>
    %cst_9 = arith.constant 2.000000e+00 : f32
    %20 = vector.broadcast %cst_9 : f32 to vector<4x128xf32>
    %21 = arith.mulf %20, %19 : vector<4x128xf32>
    %cst_10 = arith.constant 1.000000e+00 : f32
    %22 = vector.broadcast %cst_10 : f32 to vector<4x128xf32>
    %23 = arith.subf %22, %21 : vector<4x128xf32>
    %cst_11 = arith.constant 2.000000e+00 : f32
    %24 = vector.broadcast %cst_11 : f32 to vector<4x128xf32>
    %25 = arith.mulf %24, %18 : vector<4x128xf32>
    %26 = arith.mulf %25, %23 : vector<4x128xf32>
    %27 = arith.mulf %18, %18 : vector<4x128xf32>
    %cst_12 = arith.constant 2.000000e+00 : f32
    %28 = vector.broadcast %cst_12 : f32 to vector<4x128xf32>
    %29 = arith.mulf %28, %27 : vector<4x128xf32>
    %cst_13 = arith.constant 1.000000e+00 : f32
    %30 = vector.broadcast %cst_13 : f32 to vector<4x128xf32>
    %31 = arith.subf %30, %29 : vector<4x128xf32>
    %32 = tpu.concatenate %6, %7, %10, %15, %18, %23, %26, %31 in 0 : vector<4x128xf32>, vector<4x128xf32>, vector<4x128xf32>, vector<4x128xf32>, vector<4x128xf32>, vector<4x128xf32>, vector<4x128xf32>, vector<4x128xf32> -> vector<32x128xf32>
    %c0_14 = arith.constant 0 : index
    %c0_15 = arith.constant 0 : index
    %33 = vector.load %arg3[%c0_14, %c0_15] : memref<16x32xf32, #tpu.memory_space<vmem>>, vector<16x32xf32>
    %cst_16 = arith.constant dense<0.000000e+00> : vector<16x128xf32>
    %34 = tpu.matmul %33, %32, %cst_16 {dimension_numbers = #tpu.dot_dimension_numbers<[1], [0], [0], [1], [0, 0, 1, 1], [], []>} : vector<16x32xf32>, vector<32x128xf32>, vector<16x128xf32> -> vector<16x128xf32>
    %35 = arith.addf %5, %34 : vector<16x128xf32>
    %cst_17 = arith.constant 0.000000e+00 : f32
    %36 = vector.broadcast %cst_17 : f32 to vector<16x128xf32>
    %37 = arith.maximumf %35, %36 : vector<16x128xf32>
    %c0_18 = arith.constant 0 : index
    %c0_19 = arith.constant 0 : index
    %38 = vector.load %arg5[%c0_18, %c0_19] : memref<16x32xf32, #tpu.memory_space<vmem>>, vector<16x32xf32>
    %cst_20 = arith.constant dense<0.000000e+00> : vector<128x32xf32>
    %39 = tpu.matmul %37, %38, %cst_20 {dimension_numbers = #tpu.dot_dimension_numbers<[0], [0], [1], [1], [0, 1, 1, 1], [], []>} : vector<16x128xf32>, vector<16x32xf32>, vector<128x32xf32> -> vector<128x32xf32>
    %c0_21 = arith.constant 0 : index
    %c0_22 = arith.constant 0 : index
    %40 = vector.load %arg6[%c0_21, %c0_22] : memref<1x32xf32, #tpu.memory_space<vmem>>, vector<1x32xf32>
    %41 = vector.broadcast %40 : vector<1x32xf32> to vector<128x32xf32>
    %42 = arith.addf %39, %41 : vector<128x32xf32>
    %c0_23 = arith.constant 0 : index
    %c0_24 = arith.constant 0 : index
    %43 = vector.load %arg7[%c0_23, %c0_24] : memref<128x32xf32, #tpu.memory_space<vmem>>, vector<128x32xf32>
    tpu.vector_store %arg7[%c0_23, %c0_24], %42 {strides = array<i32>} : memref<128x32xf32, #tpu.memory_space<vmem>>, vector<128x32xf32>,
    return
  }
  func.func @transform_0(%arg0: i32) -> (i32, i32) {
    %c0_i32 = arith.constant 0 : i32
    %c0_i32_0 = arith.constant 0 : i32
    return %c0_i32, %arg0 : i32, i32
  }
  func.func @transform_1(%arg0: i32) -> (i32, i32) {
    %c0_i32 = arith.constant 0 : i32
    %c0_i32_0 = arith.constant 0 : i32
    %c0_i32_1 = arith.constant 0 : i32
    return %c0_i32, %c0_i32_0 : i32, i32
  }
  func.func @transform_2(%arg0: i32) -> (i32, i32) {
    %c0_i32 = arith.constant 0 : i32
    %c0_i32_0 = arith.constant 0 : i32
    %c0_i32_1 = arith.constant 0 : i32
    return %c0_i32, %c0_i32_0 : i32, i32
  }
  func.func @transform_3(%arg0: i32) -> (i32, i32) {
    %c0_i32 = arith.constant 0 : i32
    %c0_i32_0 = arith.constant 0 : i32
    %c0_i32_1 = arith.constant 0 : i32
    return %c0_i32, %c0_i32_0 : i32, i32
  }
  func.func @transform_4(%arg0: i32) -> (i32, i32) {
    %c0_i32 = arith.constant 0 : i32
    %c0_i32_0 = arith.constant 0 : i32
    %c0_i32_1 = arith.constant 0 : i32
    return %c0_i32, %c0_i32_0 : i32, i32
  }
  func.func @transform_5(%arg0: i32) -> (i32, i32) {
    %c0_i32 = arith.constant 0 : i32
    %c0_i32_0 = arith.constant 0 : i32
    %c0_i32_1 = arith.constant 0 : i32
    return %c0_i32, %c0_i32_0 : i32, i32
  }
  func.func @transform_6(%arg0: i32) -> (i32, i32) {
    %c0_i32 = arith.constant 0 : i32
    %c0_i32_0 = arith.constant 0 : i32
    return %arg0, %c0_i32 : i32, i32
  }
}

</mosaic_0001>

<bundles_post_ra>
// kernel: tpu_custom_call.1
= control target key start
LH: loop header
LB: loop body
LE: loop exit
PB: predicated region body
PF: predicated region fallthrough
CT: control target
= control target key end

     0   :  { %vm45_vm0 = vcmask 1043456   ;;  %vm38_vm1 = vcmask 31744   ;;  %v664_v4 = vmov 0   ;;  %v665_v14 = vmov 683565275   ;;  %s879_s0 = inlined_call_operand.vmem [shape: f32[4,128], index: 0, kind: input, shape index: {}]   ;;  %s880_s1 = inlined_call_operand.vmem [shape: f32[16,4], index: 1, kind: input, shape index: {}]   ;;  %s881_s3 = inlined_call_operand.vmem [shape: f32[16,1], index: 3, kind: input, shape index: {}]   ;;  %s882_s2 = inlined_call_operand.vmem [shape: f32[16,32], index: 2, kind: input, shape index: {}]   ;;  %s883_s4 = inlined_call_operand.vmem [shape: f32[16,32], index: 4, kind: input, shape index: {}]   ;;  %s884_s5 = inlined_call_operand.vmem [shape: f32[1,32], index: 5, kind: input, shape index: {}]   ;;  %s885_s6 = inlined_call_operand.vmem [shape: f32[128,32], index: 6, kind: output, shape index: {}]  }
   0x1   :  { %v709_v0 = vld [vmem:[%s879_s0] sm:$0xf]  ;;  %v25_v2 = vld [vmem:[%s880_s1 + $0x8] sm:$0xff]  ;;  %662 = vset.pattern.permute.xlu0 %v664_v4  ;;  %v666_v16 = vmov 2475754826  }
   0x2   :  { %647 = vmatpush.msk.msra.mxu1 %vm45_vm0, %v709_v0  ;;  %v75_v1 = vand.u32 2139095040, %v709_v0  ;;  %620 = vmatpush.msk.msra.mxu0 %vm45_vm0, %v709_v0  ;;  %v72_v5 = vand.u32 2147483647, %v709_v0  ;;  %v667_v18 = vmov 2131351028   ;;  %vm74_vm14 = vcmp.lt.s32.totalorder %v709_v0, 0 }
   0x3   :  { %622 = vmatmul.msk.f32.vlgmr.msra.gmra.mxu1 %vm38_vm1, %v25_v2  ;;  %v668_v20 = vmov 2102212464   ;;  %v669_v22 = vmov 920167782   ;;  %v670_v28 = vmov 1326507024  }
   0x4   :  { %v76_v3 = vshrl.u32 %v75_v1, 23  ;;  %v79_v8 = vand.u32 8388607, %v72_v5  ;;  %vm73_vm15 = vcmp.le.f32.partialorder %v72_v5, 0.7853982 }
   0x6   :  { %v623_v6 = vadd.s32 4294967169, %v76_v3  ;;  %v80_v11 = vor.u32 8388608, %v79_v8 }
   0x8   :  { %v82_v7 = vadd.s32 1, %v623_v6  ;;  %v727_v30 = vshll.u32 %v80_v11, 8 }
   0xa   :  { %vm83_vm2 = vcmp.gt.s32.totalorder %v82_v7, 0  ;;  %v121_v42 = vand.u32 65535, %v727_v30  ;;  %v122_v45 = vshrl.u32 %v727_v30, 16 }
   0xb   :  { %v84_v9 = vsel %vm83_vm2, %v82_v7, 0 }
   0xc   :  { %v86_v10 = vand.u32 31, %v84_v9  ;;  %v724_v12 = vshrl.u32 %v84_v9, 5 }
   0xe   :  { %v87_v13 = vsub.s32 32, %v86_v10  ;;  %v89_v15 = vshll.u32 %v665_v14, %v86_v10  ;;  %v92_v17 = vshll.u32 %v666_v16, %v86_v10  ;;  %v95_v19 = vshll.u32 %v667_v18, %v86_v10 }
   0xf   :  { %v98_v21 = vshll.u32 %v668_v20, %v86_v10  ;;  %v101_v23 = vshll.u32 %v669_v22, %v86_v10  ;;  %vm104_vm3 = vcmp.lt.s32.totalorder %v724_v12, 1  ;;  %vm107_vm4 = vcmp.lt.s32.totalorder %v724_v12, 4 }
  0x10   :  { %v90_v24 = vshrl.u32 %v666_v16, %v87_v13  ;;  %v93_v25 = vshrl.u32 %v667_v18, %v87_v13  ;;  %v96_v26 = vshrl.u32 %v668_v20, %v87_v13  ;;  %v99_v27 = vshrl.u32 %v669_v22, %v87_v13 }
  0x11   :  { %v102_v29 = vshrl.u32 %v670_v28, %v87_v13  ;;  %vm106_vm5 = vcmp.lt.s32.totalorder %v724_v12, 3  ;;  %vm105_vm6 = vcmp.lt.s32.totalorder %v724_v12, 2  ;;  %v88_v60 = vshrl.u32 %v665_v14, %v87_v13 }
  0x12   :  { %v91_v31 = vor.u32 %v90_v24, %v89_v15  ;;  %v94_v32 = vor.u32 %v93_v25, %v92_v17  ;;  %v97_v33 = vor.u32 %v96_v26, %v95_v19  ;;  %v100_v34 = vor.u32 %v99_v27, %v98_v21 }
  0x13   :  { %v103_v35 = vor.u32 %v102_v29, %v101_v23 }
  0x14   :  { %v112_v36 = vsel %vm104_vm3, %v91_v31, %v94_v32  ;;  %v116_v37 = vsel %vm104_vm3, %v94_v32, %v97_v33  ;;  %v113_v38 = vsel %vm107_vm4, %v100_v34, 920167782  ;;  %v109_v61 = vsel %vm107_vm4, %v97_v33, 2102212464 }
  0x15   :  { %v117_v39 = vsel %vm107_vm4, %v103_v35, 1326507024  ;;  %v114_v40 = vsel %vm106_vm5, %v97_v33, %v113_v38  ;;  %v108_v11 = vsel %vm104_vm3, %v88_v60, %v91_v31  ;;  %v110_v13 = vsel %vm106_vm5, %v94_v32, %v109_v61 }
  0x16   :  { %v118_v41 = vsel %vm106_vm5, %v100_v34, %v117_v39  ;;  %v115_v43 = vsel %vm105_vm6, %v112_v36, %v114_v40  ;;  %v111_v20 = vsel %vm105_vm6, %v108_v11, %v110_v13  ;;  %v27_v11 = vld [vmem:[%s881_s3 + $0x8] sm:$0xff] }
  0x17   :  { %v119_v44 = vsel %vm105_vm6, %v116_v37, %v118_v41  ;;  %v145_v48 = vand.u32 65535, %v115_v43  ;;  %v146_v49 = vshrl.u32 %v115_v43, 16  ;;  %v165_v26 = vmul.u32 %v727_v30, %v111_v20 }
  0x18   :  { %v123_v46 = vand.u32 65535, %v119_v44  ;;  %v124_v47 = vshrl.u32 %v119_v44, 16 }
  0x19   :  { %v148_v52 = vmul.u32 %v146_v49, %v121_v42  ;;  %v147_v54 = vmul.u32 %v145_v48, %v121_v42  ;;  %v149_v55 = vmul.u32 %v145_v48, %v122_v45  ;;  %v150_v58 = vmul.u32 %v146_v49, %v122_v45 }
  0x1a   :  { %v125_v50 = vmul.u32 %v123_v46, %v121_v42  ;;  %v126_v51 = vmul.u32 %v124_v47, %v121_v42  ;;  %v127_v53 = vmul.u32 %v123_v46, %v122_v45  ;;  %v128_v56 = vmul.u32 %v124_v47, %v122_v45 }
  0x1b   :  { %v151_v59 = vshll.u32 %v148_v52, 16  ;;  %v153_v63 = vshll.u32 %v149_v55, 16  ;;  %v152_v7 = vshrl.u32 %v148_v52, 16  ;;  %v154_v18 = vshrl.u32 %v149_v55, 16 }
  0x1c   :  { %v129_v57 = vshll.u32 %v126_v51, 16  ;;  %v131_v62 = vshll.u32 %v127_v53, 16  ;;  %v130_v3 = vshrl.u32 %v126_v51, 16  ;;  %v132_v16 = vshrl.u32 %v127_v53, 16 }
  0x1d   :  { %vm155_vm8 = vc.u32 %v147_v54, %v151_v59  ;;  %v157_v2 = vadd.s32 %v151_v59, %v147_v54 }
  0x1e   :  { %vm133_vm7 = vc.u32 %v125_v50, %v129_v57  ;;  %v135_v1 = vadd.s32 %v129_v57, %v125_v50  ;;  %v156_v8 = vsel %vm155_vm8, 1, %v664_v4  ;;  %vm414_vm8 = vcmask 261120  }
  0x1f   :  { %v134_v6 = vsel %vm133_vm7, 1, %v664_v4  ;;  %v158_v10 = vadd.s32 %v156_v8, %v150_v58  ;;  %vm159_vm10 = vc.u32 %v157_v2, %v153_v63  ;;  %v161_v22 = vadd.s32 %v157_v2, %v153_v63  ;;  %v26_v63 = vld [vmem:[%s881_s3] sm:$0xff] }
  0x20   :  { %v136_v9 = vadd.s32 %v134_v6, %v128_v56  ;;  %vm137_vm9 = vc.u32 %v135_v1, %v131_v62  ;;  %v160_v15 = vsel %vm159_vm10, 1, %v664_v4  ;;  %30 = vperm.xlu0 %662, %v26_v63   ;;  %v24_v8 = vld [vmem:[%s880_s1] sm:$0xff] }
  0x21   :  { %v138_v14 = vsel %vm137_vm9, 1, %v664_v4  ;;  %v162_v19 = vadd.s32 %v160_v15, %v158_v10  ;;  %621 = vmatmul.msk.f32.vlgmr.msra.gmra.mxu0 %vm38_vm1, %v24_v8  ;;  %vm215_vm1 = vweird.f32 %v709_v0 }
  0x22   :  { %v140_v17 = vadd.s32 %v138_v14, %v136_v9 }
  0x23   :  { %v163_v23 = vadd.s32 %v162_v19, %v152_v7 }
  0x24   :  { %v141_v21 = vadd.s32 %v140_v17, %v130_v3 }
  0x25   :  { %v164_v25 = vadd.s32 %v163_v23, %v154_v18 }
  0x26   :  { %v142_v24 = vadd.s32 %v141_v21, %v132_v16 }
  0x27   :  { %v168_v27 = vadd.s32 1, %v164_v25 }
  0x28   :  { %vm167_vm11 = vc.u32 %v142_v24, %v161_v22  ;;  %v166_v37 = vadd.s32 %v161_v22, %v142_v24  ;;  %35 = vperm.xlu0 %662, %v27_v11  }
  0x29   :  { %v169_v28 = vsel %vm167_vm11, %v168_v27, %v164_v25 }
  0x2a   :  { %v170_v29 = vadd.s32 %v169_v28, %v165_v26 }
  0x2c   :  { %v171_v31 = vadd.s32 536870912, %v170_v29 }
  0x2e   :  { %v172_v4 = vshrl.u32 %v171_v31, 30 }
  0x30   :  { %v173_v32 = vshll.u32 %v172_v4, 30  ;;  %v196_v49 = vsub.s32 4, %v172_v4 }
  0x32   :  { %v174_v33 = vsub.s32 %v170_v29, %v173_v32  ;;  %v197_v52 = vsel %vm74_vm14, %v196_v49, %v172_v4 }
  0x33   :  { %v199_v55 = vsel %vm73_vm15, 0, %v197_v52 }
  0x34   :  { %vm175_vm12 = vcmp.lt.s32.totalorder %v174_v33, 0  ;;  %v176_v34 = vsub.s32 0, %v174_v33  ;;  %v216_v60 = vadd.s32 3, %v199_v55  ;;  %v371_v3 = vand.u32 3, %v199_v55 }
  0x36   :  { %v177_v35 = vsel %vm175_vm12, %v176_v34, %v174_v33  ;;  %v217_v2 = vand.u32 3, %v216_v60  ;;  %vm376_vm3 = vcmp.eq.s32.totalorder %v371_v3, 2  ;;  %vm373_vm6 = vcmp.eq.s32.totalorder %v371_v3, 0 }
  0x37   :  { %v178_v12 = vclz %v177_v35  ;;  %vm372_vm7 = vcmp.lt.s32.totalorder %v371_v3, 2 }
  0x38   :  { %vm222_vm2 = vcmp.eq.s32.totalorder %v217_v2, 2  ;;  %vm218_vm4 = vcmp.lt.s32.totalorder %v217_v2, 2  ;;  %vm219_vm5 = vcmp.eq.s32.totalorder %v217_v2, 0 }
  0x39   :  { %v624_v36 = vadd.s32 4294967294, %v178_v12 }
  0x3b   :  { %vm625_vm13 = vcmp.lt.s32.totalorder %v624_v36, 0 }
  0x3c   :  { %v181_v38 = vsel %vm625_vm13, 0, %v624_v36 }
  0x3d   :  { %v182_v39 = vsub.s32 32, %v181_v38  ;;  %v183_v40 = vshll.u32 %v174_v33, %v181_v38  ;;  %v186_v41 = vsub.s32 4294967266, %v181_v38 }
  0x3f   :  { %v184_v30 = vshrl.u32 %v166_v37, %v182_v39  ;;  %v187_v42 = vadd.s32 127, %v186_v41 }
  0x41   :  { %v185_v43 = vor.u32 %v184_v30, %v183_v40  ;;  %v188_v44 = vshll.u32 %v187_v42, 23 }
  0x43   :  { %v189_v45 = vor.u32 4788187, %v188_v44  ;;  %v192_v46 = vcvt.s32.f32 %v185_v43  ;;  %v412_v44 = vld [vmem:[%s882_s2] sm:$0xff] }
  0x45   :  { %v190_v47 = vand.u32 2147483647, %v189_v45  ;;  %v413_v45 = vld [vmem:[%s882_s2 + $0x8] sm:$0xff] }
  0x47   :  { %v193_v48 = vmul.f32 %v192_v46, %v190_v47  ;;  %v449_v46 = vld [vmem:[%s883_s4 + $0x8] sm:$0xff]  ;;  %v448_v47 = vld [vmem:[%s883_s4] sm:$0xff] }
  0x48   :  { %549 = vmatpush.msrb.mxu0 %v449_v46  ;;  %649 = vmatpush.msra.mxu2 %v449_v46 }
  0x49   :  { %v194_v50 = vxor.u32 2147483648, %v193_v48  ;;  %650 = vmatpush.msra.mxu3 %v449_v46 }
  0x4a   :  { %550 = vmatpush.msrb.mxu0 %v448_v47  ;;  %652 = vmatpush.msra.mxu2 %v448_v47 }
  0x4b   :  { %v195_v51 = vsel %vm74_vm14, %v194_v50, %v193_v48  ;;  %653 = vmatpush.msra.mxu3 %v448_v47 }
  0x4c   :  { %v198_v53 = vsel %vm73_vm15, %v709_v0, %v195_v51 }
  0x4d   :  { %v200_v54 = vmul.f32 %v198_v53, %v198_v53 }
  0x4f   :  { %v201_v56 = vmul.f32 -0.001358992, %v200_v54  ;;  %v208_v57 = vmul.f32 -0.00019511016, %v200_v54 }
  0x51   :  { %v202_v58 = vadd.f32 0.041655596, %v201_v56  ;;  %v209_v59 = vadd.f32 0.008332121, %v208_v57 }
  0x53   :  { %v203_v61 = vmul.f32 %v202_v58, %v200_v54  ;;  %v210_v62 = vmul.f32 %v209_v59, %v200_v54 }
  0x55   :  { %v204_v1 = vadd.f32 -0.4999988, %v203_v61  ;;  %v211_v5 = vadd.f32 -0.16666654, %v210_v62 }
  0x57   :  { %v205_v6 = vmul.f32 %v204_v1, %v200_v54  ;;  %v212_v7 = vmul.f32 %v211_v5, %v200_v54 }
  0x59   :  { %v206_v9 = vadd.f32 1.0, %v205_v6  ;;  %v213_v10 = vadd.f32 1.0, %v212_v7 }
  0x5b   :  { %v214_v13 = vmul.f32 %v213_v10, %v198_v53  ;;  %v223_v14 = vxor.u32 2147483648, %v206_v9 }
  0x5d   :  { %v220_v15 = vxor.u32 2147483648, %v214_v13  ;;  %v224_v16 = vsel %vm222_vm2, %v223_v14, %v214_v13  ;;  %v378_v17 = vsel %vm376_vm3, %v223_v14, %v214_v13 }
  0x5f   :  { %v221_v18 = vsel %vm219_vm5, %v206_v9, %v220_v15  ;;  %v375_v19 = vsel %vm373_vm6, %v206_v9, %v220_v15  ;;  %v663_v15 = vld [vmem:[%s884_s5] ss:$0 sm:$0xff] }
  0x60   :  { %v225_v20 = vsel %vm218_vm4, %v221_v18, %v224_v16  ;;  %v379_v21 = vsel %vm372_vm7, %v375_v19, %v378_v17 }
  0x61   :  { %v226_v22 = vsel %vm215_vm1, nan, %v225_v20  ;;  %v380_v23 = vsel %vm215_vm1, nan, %v379_v21 }
  0x62   :  { %v381_v24 = vmul.f32 2.0, %v226_v22  ;;  %v383_v25 = vmul.f32 %v226_v22, %v226_v22  ;;  %v397_v30 = vrot.slane %v380_v23, 4 }
  0x64   :  { %v382_v26 = vmul.f32 %v381_v24, %v380_v23  ;;  %v384_v27 = vmul.f32 2.0, %v383_v25  ;;  %v408_v43 = vsel %vm45_vm0, %v226_v22, %v397_v30 }
  0x66   :  { %v385_v28 = vsub.f32 1.0, %v384_v27  ;;  %v386_v29 = vmul.f32 2.0, %v382_v26  ;;  %v388_v31 = vmul.f32 %v382_v26, %v382_v26 }
  0x68   :  { %v387_v4 = vmul.f32 %v386_v29, %v385_v28  ;;  %v389_v32 = vmul.f32 2.0, %v388_v31  ;;  %v400_v39 = vrot.slane %v385_v28, 4 }
  0x6a   :  { %v390_v33 = vsub.f32 1.0, %v389_v32  ;;  %v391_v34 = vmul.f32 2.0, %v387_v4  ;;  %v393_v35 = vmul.f32 %v387_v4, %v387_v4  ;;  %v409_v42 = vsel %vm45_vm0, %v382_v26, %v400_v39 }
  0x6c   :  { %v394_v12 = vmul.f32 2.0, %v393_v35  ;;  %v392_v0 = vmul.f32 %v391_v34, %v390_v33  ;;  %v403_v37 = vrot.slane %v390_v33, 4 }
  0x6e   :  { %v395_v36 = vsub.f32 1.0, %v394_v12  ;;  %v410_v41 = vsel %vm45_vm0, %v387_v4, %v403_v37 }
  0x70   :  { %v406_v38 = vrot.slane %v395_v36, 4 }
  0x72   :  { %v411_v40 = vsel %vm45_vm0, %v392_v0, %v406_v38  ;;  %vm486_vm0 = vcmask 130048  }
  0x73   :  { %433 = vmatpush.msrb.mxu1 %v411_v40 }
  0x75   :  { %434 = vmatpush.msrb.mxu1 %v410_v41 }
  0x77   :  { %435 = vmatpush.msrb.mxu1 %v409_v42 }
  0x79   :  { %436 = vmatpush.msrb.mxu1 %v408_v43 }
  0x7a   :  { %629 = vmatmul.msk.f32.vlgmr.msrb.gmra.mxu1 %vm414_vm8, %v412_v44 }
  0x7b   :  { %648 = vmatpush.msra.mxu1 %v449_v46 }
  0x7d   :  { %651 = vmatpush.msra.mxu1 %v448_v47 }
  0x80   :  { %v69_v48 = vpop.f32.mrf.mxu1 }
  0x82   :  { %630 = vmatmul.msk.f32.gmra.mxu1 %vm414_vm8, %v413_v45 }
  0x92   :  { %v31_v49 = vpop.permute.xlu0 %30 }
  0x9a   :  { %v36_v55 = vpop.permute.xlu0 %35 }
  0x9b   :  { %v70_v56 = vadd.f32 %v69_v48, %v36_v55 }
  0x9e   :  { %v66_v50 = vpop.f32.mrf.mxu0 }
  0x9f   :  { %v67_v51 = vadd.f32 %v66_v50, %v31_v49 }
  0xf7   :  { %v438_v52 = vpop.f32.mrf.mxu1 }
  0xf8   :  { %v444_v53 = vadd.f32 %v438_v52, %v67_v51 }
  0xfa   :  { %v446_v54 = vmax.f32 %v444_v53, 0.0 }
  0xfc   :  { %454 = vxpose.xlu1.b32.start [1/2] (short) %v446_v54, 128 }
  0xff   :  { %v441_v57 = vpop.f32.mrf.mxu1 }
 0x100   :  { %v445_v58 = vadd.f32 %v441_v57, %v70_v56 }
 0x102   :  { %v447_v59 = vmax.f32 %v445_v58, 0.0 }
 0x104   :  { %455 = vxpose.xlu1.b32.end [2/2] (short) %v447_v59, 128 }
 0x1a0   :  { %v470_v60 = vpop.trf.xlu1 }
 0x1a1   :  { %631 = vmatmul.msk.f32.vlgmr.msrb.gmra.mxu0 %vm486_vm0, %v470_v60 }
 0x1a8   :  { %v471_v61 = vpop.trf.xlu1 }
 0x1a9   :  { %632 = vmatmul.msk.f32.gmra.mxu0 %vm486_vm0, %v471_v61 }
 0x1b0   :  { %v472_v62 = vpop.trf.xlu1 }
 0x1b1   :  { %633 = vmatmul.msk.f32.gmra.mxu0 %vm486_vm0, %v472_v62 }
 0x1b8   :  { %v473_v63 = vpop.trf.xlu1 }
 0x1b9   :  { %634 = vmatmul.msk.f32.gmra.mxu0 %vm486_vm0, %v473_v63 }
 0x1c0   :  { %v474_v1 = vpop.trf.xlu1 }
 0x1c1   :  { %635 = vmatmul.msk.f32.vlgmr.msra.gmra.mxu1 %vm486_vm0, %v474_v1 }
 0x1c8   :  { %v475_v5 = vpop.trf.xlu1 }
 0x1c9   :  { %636 = vmatmul.msk.f32.gmra.mxu1 %vm486_vm0, %v475_v5 }
 0x1d0   :  { %v476_v2 = vpop.trf.xlu1 }
 0x1d1   :  { %637 = vmatmul.msk.f32.vlgmr.msra.gmra.mxu2 %vm486_vm0, %v476_v2 }
 0x1d8   :  { %v477_v3 = vpop.trf.xlu1 }
 0x1d9   :  { %638 = vmatmul.msk.f32.gmra.mxu2 %vm486_vm0, %v477_v3 }
 0x1e0   :  { %v478_v6 = vpop.trf.xlu1 }
 0x1e1   :  { %639 = vmatmul.msk.f32.gmra.mxu2 %vm486_vm0, %v478_v6 }
 0x1e8   :  { %v479_v7 = vpop.trf.xlu1 }
 0x1e9   :  { %640 = vmatmul.msk.f32.gmra.mxu2 %vm486_vm0, %v479_v7 }
 0x1f0   :  { %v480_v8 = vpop.trf.xlu1 }
 0x1f1   :  { %641 = vmatmul.msk.f32.gmra.mxu2 %vm486_vm0, %v480_v8 }
 0x1f8   :  { %v481_v9 = vpop.trf.xlu1 }
 0x1f9   :  { %642 = vmatmul.msk.f32.vlgmr.msra.gmra.mxu3 %vm486_vm0, %v481_v9 }
 0x200   :  { %v482_v10 = vpop.trf.xlu1 }
 0x201   :  { %643 = vmatmul.msk.f32.gmra.mxu3 %vm486_vm0, %v482_v10 }
 0x208   :  { %v483_v11 = vpop.trf.xlu1 }
 0x209   :  { %644 = vmatmul.msk.f32.gmra.mxu3 %vm486_vm0, %v483_v11 }
 0x210   :  { %v484_v13 = vpop.trf.xlu1 }
 0x211   :  { %645 = vmatmul.msk.f32.gmra.mxu3 %vm486_vm0, %v484_v13 }
 0x218   :  { %v485_v14 = vpop.trf.xlu1 }
 0x219   :  { %646 = vmatmul.msk.f32.gmra.mxu3 %vm486_vm0, %v485_v14 }
 0x21e   :  { %v552_v16 = vpop.f32.mrf.mxu0 }
 0x21f   :  { %v553_v17 = vadd.f32 %v663_v15, %v552_v16 }
 0x221   :  { %600 = vst.msk [vmem:[%s885_s6] sm:$0xff] %vm414_vm8, %v553_v17 }
 0x226   :  { %v555_v18 = vpop.f32.mrf.mxu0 }
 0x227   :  { %v556_v19 = vadd.f32 %v663_v15, %v555_v18 }
 0x229   :  { %601 = vst.msk [vmem:[%s885_s6 + $0x8] sm:$0xff] %vm414_vm8, %v556_v19 }
 0x22e   :  { %v558_v20 = vpop.f32.mrf.mxu0 }
 0x22f   :  { %v559_v21 = vadd.f32 %v663_v15, %v558_v20 }
 0x231   :  { %602 = vst.msk [vmem:[%s885_s6 + $0x10] sm:$0xff] %vm414_vm8, %v559_v21 }
 0x236   :  { %v561_v22 = vpop.f32.mrf.mxu0 }
 0x237   :  { %v562_v23 = vadd.f32 %v663_v15, %v561_v22 }
 0x239   :  { %603 = vst.msk [vmem:[%s885_s6 + $0x18] sm:$0xff] %vm414_vm8, %v562_v23 }
 0x23e   :  { %v564_v24 = vpop.f32.mrf.mxu1 }
 0x23f   :  { %v565_v25 = vadd.f32 %v663_v15, %v564_v24 }
 0x241   :  { %604 = vst.msk [vmem:[%s885_s6 + $0x20] sm:$0xff] %vm414_vm8, %v565_v25 }
 0x246   :  { %v567_v26 = vpop.f32.mrf.mxu1 }
 0x247   :  { %v568_v27 = vadd.f32 %v663_v15, %v567_v26 }
 0x249   :  { %605 = vst.msk [vmem:[%s885_s6 + $0x28] sm:$0xff] %vm414_vm8, %v568_v27 }
 0x254   :  { %v570_v28 = vpop.f32.mrf.mxu2 }
 0x255   :  { %v571_v29 = vadd.f32 %v663_v15, %v570_v28 }
 0x257   :  { %606 = vst.msk [vmem:[%s885_s6 + $0x30] sm:$0xff] %vm414_vm8, %v571_v29 }
 0x25c   :  { %v573_v31 = vpop.f32.mrf.mxu2 }
 0x25d   :  { %v574_v4 = vadd.f32 %v663_v15, %v573_v31 }
 0x25f   :  { %607 = vst.msk [vmem:[%s885_s6 + $0x38] sm:$0xff] %vm414_vm8, %v574_v4 }
 0x264   :  { %v576_v32 = vpop.f32.mrf.mxu2 }
 0x265   :  { %v577_v33 = vadd.f32 %v663_v15, %v576_v32 }
 0x267   :  { %608 = vst.msk [vmem:[%s885_s6 + $0x40] sm:$0xff] %vm414_vm8, %v577_v33 }
 0x26c   :  { %v579_v34 = vpop.f32.mrf.mxu2 }
 0x26d   :  { %v580_v35 = vadd.f32 %v663_v15, %v579_v34 }
 0x26f   :  { %609 = vst.msk [vmem:[%s885_s6 + $0x48] sm:$0xff] %vm414_vm8, %v580_v35 }
 0x274   :  { %v582_v12 = vpop.f32.mrf.mxu2 }
 0x275   :  { %v583_v0 = vadd.f32 %v663_v15, %v582_v12 }
 0x277   :  { %610 = vst.msk [vmem:[%s885_s6 + $0x50] sm:$0xff] %vm414_vm8, %v583_v0 }
 0x27c   :  { %v585_v36 = vpop.f32.mrf.mxu3 }
 0x27d   :  { %v586_v37 = vadd.f32 %v663_v15, %v585_v36 }
 0x27f   :  { %611 = vst.msk [vmem:[%s885_s6 + $0x58] sm:$0xff] %vm414_vm8, %v586_v37 }
 0x284   :  { %v588_v38 = vpop.f32.mrf.mxu3 }
 0x285   :  { %v589_v39 = vadd.f32 %v663_v15, %v588_v38 }
 0x287   :  { %612 = vst.msk [vmem:[%s885_s6 + $0x60] sm:$0xff] %vm414_vm8, %v589_v39 }
 0x28c   :  { %v591_v40 = vpop.f32.mrf.mxu3 }
 0x28d   :  { %v592_v41 = vadd.f32 %v663_v15, %v591_v40 }
 0x28f   :  { %613 = vst.msk [vmem:[%s885_s6 + $0x68] sm:$0xff] %vm414_vm8, %v592_v41 }
 0x294   :  { %v594_v30 = vpop.f32.mrf.mxu3 }
 0x295   :  { %v595_v42 = vadd.f32 %v663_v15, %v594_v30 }
 0x297   :  { %614 = vst.msk [vmem:[%s885_s6 + $0x70] sm:$0xff] %vm414_vm8, %v595_v42 }
 0x29c   :  { %v597_v43 = vpop.f32.mrf.mxu3 }
 0x29d   :  { %v598_v44 = vadd.f32 %v663_v15, %v597_v43 }
 0x29f   :  { %615 = vst.msk [vmem:[%s885_s6 + $0x78] sm:$0xff] %vm414_vm8, %v598_v44 }

</bundles_post_ra>
